<compile_context>
chip_gen: v6e
topology: v6e:2x2x1
jax: 0.10.0
libtpu: 0.0.40
codegen_flags: <defaults>
</compile_context>

<pallas_src>
import functools

import jax
import jax.numpy as jnp
from jax.experimental import pallas as pl
from jax.experimental.pallas import tpu as pltpu

BN_EPS = 1e-5


def _round_up(n, m):
    return ((n + m - 1) // m) * m


# --------------------------------------------------------------------------
# Pass 1: accumulate sum / sum-of-squares of the 2nd hidden activation.
# --------------------------------------------------------------------------
def stats_kernel(x_ref, w1_ref, b1_ref, w2_ref, b2_ref,
                 sum_ref, sumsq_ref, *, tb, b_true, b_pad):
    i = pl.program_id(0)

    @pl.when(i == 0)
    def _():
        sum_ref[...] = jnp.zeros_like(sum_ref)
        sumsq_ref[...] = jnp.zeros_like(sumsq_ref)

    z = jnp.dot(x_ref[...], w1_ref[...], preferred_element_type=jnp.float32)
    z = jnp.maximum(z + b1_ref[...], 0.0)
    z = jnp.dot(z, w2_ref[...], preferred_element_type=jnp.float32)
    z = jnp.maximum(z + b2_ref[...], 0.0)

    if b_pad != b_true:
        # Exclude padded rows from the batch statistics.
        row = i * tb + jax.lax.broadcasted_iota(jnp.int32, z.shape, 0)
        z = jnp.where(row < b_true, z, 0.0)

    sum_ref[...] += jnp.sum(z, axis=0, keepdims=True)
    sumsq_ref[...] += jnp.sum(z * z, axis=0, keepdims=True)


# --------------------------------------------------------------------------
# Pass 2: full forward with BN (as an affine) folded into the last linear.
# --------------------------------------------------------------------------
def forward_kernel(x_ref, w1_ref, b1_ref, w2_ref, b2_ref, w3_ref, b3_ref,
                   out_ref):
    z = jnp.dot(x_ref[...], w1_ref[...], preferred_element_type=jnp.float32)
    z = jnp.maximum(z + b1_ref[...], 0.0)
    z = jnp.dot(z, w2_ref[...], preferred_element_type=jnp.float32)
    z = jnp.maximum(z + b2_ref[...], 0.0)
    z = jnp.dot(z, w3_ref[...], preferred_element_type=jnp.float32)
    out_ref[...] = z + b3_ref[...]


@functools.partial(jax.jit, static_argnames=("tb",))
def cvmlp_bn_forward(x, params, *, tb=1024):
    b_true, input_dim = x.shape
    hid = params["w2"].shape[1]
    out_dim = params["w3"].shape[1]

    # Tile the batch axis; pad to a multiple of the (sublane-aligned) tile.
    tb = min(tb, _round_up(b_true, 8))
    b_pad = _round_up(b_true, tb)
    if b_pad != b_true:
        x = jnp.pad(x, ((0, b_pad - b_true), (0, 0)))
    grid = (b_pad // tb,)

    x_spec = pl.BlockSpec((tb, input_dim), lambda i: (i, 0))
    full = lambda a: pl.BlockSpec(a.shape, lambda i: (0, 0))

    # ---- pass 1: global batch statistics --------------------------------
    s, ss = pl.pallas_call(
        functools.partial(stats_kernel, tb=tb, b_true=b_true, b_pad=b_pad),
        grid=grid,
        out_shape=(jax.ShapeDtypeStruct((1, hid), jnp.float32),
                   jax.ShapeDtypeStruct((1, hid), jnp.float32)),
        in_specs=[x_spec,
                  full(params["w1"]), full(params["b1"]),
                  full(params["w2"]), full(params["b2"])],
        out_specs=(pl.BlockSpec((1, hid), lambda i: (0, 0)),
                   pl.BlockSpec((1, hid), lambda i: (0, 0))),
        compiler_params=pltpu.CompilerParams(
            dimension_semantics=("arbitrary",)),
    )(x, params["w1"], params["b1"], params["w2"], params["b2"])

    # PyTorch BatchNorm1d normalizes with the biased variance (divide by N).
    mean = s / b_true
    var = ss / b_true - mean * mean
    scale = params["gamma"] * jax.lax.rsqrt(var + BN_EPS)        # (1, hid)
    shift = params["beta"] - mean * scale                        # (1, hid)
    # Fold  (h*scale + shift) @ w3 + b3  into a single linear layer.
    w3_eff = scale.T * params["w3"]                              # (hid, out)
    b3_eff = shift @ params["w3"] + params["b3"]                 # (1, out)

    # ---- pass 2: normalized forward --------------------------------------
    out = pl.pallas_call(
        forward_kernel,
        grid=grid,
        out_shape=jax.ShapeDtypeStruct((b_pad, out_dim), jnp.float32),
        in_specs=[x_spec,
                  full(params["w1"]), full(params["b1"]),
                  full(params["w2"]), full(params["b2"]),
                  full(w3_eff), full(b3_eff)],
        out_specs=pl.BlockSpec((tb, out_dim), lambda i: (i, 0)),
        compiler_params=pltpu.CompilerParams(
            dimension_semantics=("parallel",)),
    )(x, params["w1"], params["b1"], params["w2"], params["b2"],
      w3_eff, b3_eff)

    return out[:b_true]


# --------------------------------------------------------------------------
# Parameter init + pure-JAX reference.
# --------------------------------------------------------------------------
def init_params(key, input_dim, hidden_dim, output_dim):
    """PyTorch-style init: U(-1/sqrt(fan_in), 1/sqrt(fan_in))."""
    dims = [input_dim] + list(hidden_dim) + [output_dim]
    names = ["w1", "b1", "w2", "b2", "w3", "b3"]
    params = {}
    keys = jax.random.split(key, 6)
    for li in range(3):
        fan_in, fan_out = dims[li], dims[li + 1]
        k = 1.0 / jnp.sqrt(jnp.float32(fan_in))
        params[names[2 * li]] = jax.random.uniform(
            keys[2 * li], (fan_in, fan_out), jnp.float32, -k, k)
        params[names[2 * li + 1]] = jax.random.uniform(
            keys[2 * li + 1], (1, fan_out), jnp.float32, -k, k)
    params["gamma"] = jnp.ones((1, hidden_dim[1]), jnp.float32)
    params["beta"] = jnp.zeros((1, hidden_dim[1]), jnp.float32)
    return params


def reference_forward(x, p):
    z = jnp.maximum(x @ p["w1"] + p["b1"], 0.0)
    z = jnp.maximum(z @ p["w2"] + p["b2"], 0.0)
    mean = jnp.mean(z, axis=0, keepdims=True)
    var = jnp.mean((z - mean) ** 2, axis=0, keepdims=True)
    z = (z - mean) / jnp.sqrt(var + BN_EPS)
    z = z * p["gamma"] + p["beta"]
    return z @ p["w3"] + p["b3"]


if __name__ == "__main__":
    # input_dim = 45 (10 heavy atoms -> C(10,2) pairwise distances),
    # hidden_dim = [32, 32], output_dim = 1.
    input_dim, hidden_dim, output_dim = 45, (32, 32), 1
    key = jax.random.PRNGKey(0)
    k_x, k_p, k_x2 = jax.random.split(key, 3)
    params = init_params(k_p, input_dim, hidden_dim, output_dim)

    # Case 1: small batch, single tile.
    x = jax.random.normal(k_x, (8, input_dim), jnp.float32)
    out = jax.block_until_ready(cvmlp_bn_forward(x, params))
    ref = reference_forward(x, params)
    assert out.shape == (8, output_dim)
    assert jnp.allclose(out, ref, atol=1e-4, rtol=1e-4)

    # Case 2: multi-tile batch with padding (exercises the two-pass BN path).
    x2 = jax.random.normal(k_x2, (200, input_dim), jnp.float32)
    out2 = jax.block_until_ready(cvmlp_bn_forward(x2, params, tb=64))
    ref2 = reference_forward(x2, params)
    assert out2.shape == (200, output_dim)
    assert jnp.allclose(out2, ref2, atol=1e-4, rtol=1e-4)

    print("KERNEL_OK")
</pallas_src>

<mosaic_0001>
module attributes {stable_mosaic.version = 11 : i64} {
  func.func @stats_kernel(%arg0: i32, %arg1: memref<8x45xf32, #tpu.memory_space<vmem>>, %arg2: memref<45x32xf32, #tpu.memory_space<vmem>>, %arg3: memref<1x32xf32, #tpu.memory_space<vmem>>, %arg4: memref<32x32xf32, #tpu.memory_space<vmem>>, %arg5: memref<1x32xf32, #tpu.memory_space<vmem>>, %arg6: memref<1x32xf32, #tpu.memory_space<vmem>>, %arg7: memref<1x32xf32, #tpu.memory_space<vmem>>) attributes {dimension_semantics = [#tpu.dimension_semantics<arbitrary>], iteration_bounds = array<i64: 1>, scalar_prefetch = 0 : i64, scratch_operands = 0 : i64, tpu.core_type = #tpu.core_type<tc>, window_params = [{transform_indices = @transform_0, window_bounds = array<i64: 8, 45>}, {pipeline_mode = #tpu.pipeline_mode<synchronous>, transform_indices = @transform_1, window_bounds = array<i64: 45, 32>}, {pipeline_mode = #tpu.pipeline_mode<synchronous>, transform_indices = @transform_2, window_bounds = array<i64: 1, 32>}, {pipeline_mode = #tpu.pipeline_mode<synchronous>, transform_indices = @transform_3, window_bounds = array<i64: 32, 32>}, {pipeline_mode = #tpu.pipeline_mode<synchronous>, transform_indices = @transform_4, window_bounds = array<i64: 1, 32>}, {pipeline_mode = #tpu.pipeline_mode<synchronous>, transform_indices = @transform_5, window_bounds = array<i64: 1, 32>}, {pipeline_mode = #tpu.pipeline_mode<synchronous>, transform_indices = @transform_6, window_bounds = array<i64: 1, 32>}]} {
    %c0_i32 = arith.constant 0 : i32
    %0 = arith.cmpi eq, %arg0, %c0_i32 : i32
    %1 = arith.extui %0 : i1 to i32
    %c0_i32_0 = arith.constant 0 : i32
    %2 = arith.cmpi ne, %1, %c0_i32_0 : i32
    scf.if %2 {
      %cst_23 = arith.constant 0.000000e+00 : f32
      %29 = vector.broadcast %cst_23 : f32 to vector<1x32xf32>
      %c0_24 = arith.constant 0 : index
      %c0_25 = arith.constant 0 : index
      %30 = vector.load %arg6[%c0_24, %c0_25] : memref<1x32xf32, #tpu.memory_space<vmem>>, vector<1x32xf32>
      tpu.vector_store %arg6[%c0_24, %c0_25], %29 {strides = array<i32>} : memref<1x32xf32, #tpu.memory_space<vmem>>, vector<1x32xf32>,
      %cst_26 = arith.constant 0.000000e+00 : f32
      %31 = vector.broadcast %cst_26 : f32 to vector<1x32xf32>
      %c0_27 = arith.constant 0 : index
      %c0_28 = arith.constant 0 : index
      %32 = vector.load %arg7[%c0_27, %c0_28] : memref<1x32xf32, #tpu.memory_space<vmem>>, vector<1x32xf32>
      tpu.vector_store %arg7[%c0_27, %c0_28], %31 {strides = array<i32>} : memref<1x32xf32, #tpu.memory_space<vmem>>, vector<1x32xf32>,
    } else {
    }
    %c0 = arith.constant 0 : index
    %c0_1 = arith.constant 0 : index
    %3 = vector.load %arg1[%c0, %c0_1] : memref<8x45xf32, #tpu.memory_space<vmem>>, vector<8x45xf32>
    %c0_2 = arith.constant 0 : index
    %c0_3 = arith.constant 0 : index
    %4 = vector.load %arg2[%c0_2, %c0_3] : memref<45x32xf32, #tpu.memory_space<vmem>>, vector<45x32xf32>
    %cst = arith.constant dense<0.000000e+00> : vector<8x32xf32>
    %5 = tpu.matmul %3, %4, %cst {dimension_numbers = #tpu.dot_dimension_numbers<[1], [0], [0], [1], [0, 0, 1, 1], [], []>} : vector<8x45xf32>, vector<45x32xf32>, vector<8x32xf32> -> vector<8x32xf32>
    %c0_4 = arith.constant 0 : index
    %c0_5 = arith.constant 0 : index
    %6 = vector.load %arg3[%c0_4, %c0_5] : memref<1x32xf32, #tpu.memory_space<vmem>>, vector<1x32xf32>
    %7 = vector.broadcast %6 : vector<1x32xf32> to vector<8x32xf32>
    %8 = arith.addf %5, %7 : vector<8x32xf32>
    %cst_6 = arith.constant 0.000000e+00 : f32
    %9 = vector.broadcast %cst_6 : f32 to vector<8x32xf32>
    %10 = arith.maximumf %8, %9 : vector<8x32xf32>
    %c0_7 = arith.constant 0 : index
    %c0_8 = arith.constant 0 : index
    %11 = vector.load %arg4[%c0_7, %c0_8] : memref<32x32xf32, #tpu.memory_space<vmem>>, vector<32x32xf32>
    %cst_9 = arith.constant dense<0.000000e+00> : vector<8x32xf32>
    %12 = tpu.matmul %10, %11, %cst_9 {dimension_numbers = #tpu.dot_dimension_numbers<[1], [0], [0], [1], [0, 0, 1, 1], [], []>} : vector<8x32xf32>, vector<32x32xf32>, vector<8x32xf32> -> vector<8x32xf32>
    %c0_10 = arith.constant 0 : index
    %c0_11 = arith.constant 0 : index
    %13 = vector.load %arg5[%c0_10, %c0_11] : memref<1x32xf32, #tpu.memory_space<vmem>>, vector<1x32xf32>
    %14 = vector.broadcast %13 : vector<1x32xf32> to vector<8x32xf32>
    %15 = arith.addf %12, %14 : vector<8x32xf32>
    %cst_12 = arith.constant 0.000000e+00 : f32
    %16 = vector.broadcast %cst_12 : f32 to vector<8x32xf32>
    %17 = arith.maximumf %15, %16 : vector<8x32xf32>
    %c0_13 = arith.constant 0 : index
    %c0_14 = arith.constant 0 : index
    %18 = vector.load %arg6[%c0_13, %c0_14] : memref<1x32xf32, #tpu.memory_space<vmem>>, vector<1x32xf32>
    %cst_15 = arith.constant dense<0.000000e+00> : vector<32xf32>
    %19 = vector.multi_reduction <add>, %17, %cst_15 [0] : vector<8x32xf32> to vector<32xf32>
    %20 = vector.shape_cast %19 : vector<32xf32> to vector<1x32xf32>
    %21 = arith.addf %18, %20 : vector<1x32xf32>
    %c0_16 = arith.constant 0 : index
    %c0_17 = arith.constant 0 : index
    %22 = vector.load %arg6[%c0_16, %c0_17] : memref<1x32xf32, #tpu.memory_space<vmem>>, vector<1x32xf32>
    tpu.vector_store %arg6[%c0_16, %c0_17], %21 {strides = array<i32>} : memref<1x32xf32, #tpu.memory_space<vmem>>, vector<1x32xf32>,
    %c0_18 = arith.constant 0 : index
    %c0_19 = arith.constant 0 : index
    %23 = vector.load %arg7[%c0_18, %c0_19] : memref<1x32xf32, #tpu.memory_space<vmem>>, vector<1x32xf32>
    %24 = arith.mulf %17, %17 : vector<8x32xf32>
    %cst_20 = arith.constant dense<0.000000e+00> : vector<32xf32>
    %25 = vector.multi_reduction <add>, %24, %cst_20 [0] : vector<8x32xf32> to vector<32xf32>
    %26 = vector.shape_cast %25 : vector<32xf32> to vector<1x32xf32>
    %27 = arith.addf %23, %26 : vector<1x32xf32>
    %c0_21 = arith.constant 0 : index
    %c0_22 = arith.constant 0 : index
    %28 = vector.load %arg7[%c0_21, %c0_22] : memref<1x32xf32, #tpu.memory_space<vmem>>, vector<1x32xf32>
    tpu.vector_store %arg7[%c0_21, %c0_22], %27 {strides = array<i32>} : memref<1x32xf32, #tpu.memory_space<vmem>>, vector<1x32xf32>,
    return
  }
  func.func @transform_0(%arg0: i32) -> (i32, i32) {
    %c0_i32 = arith.constant 0 : i32
    %c0_i32_0 = arith.constant 0 : i32
    return %arg0, %c0_i32 : i32, i32
  }
  func.func @transform_1(%arg0: i32) -> (i32, i32) {
    %c0_i32 = arith.constant 0 : i32
    %c0_i32_0 = arith.constant 0 : i32
    %c0_i32_1 = arith.constant 0 : i32
    return %c0_i32, %c0_i32_0 : i32, i32
  }
  func.func @transform_2(%arg0: i32) -> (i32, i32) {
    %c0_i32 = arith.constant 0 : i32
    %c0_i32_0 = arith.constant 0 : i32
    %c0_i32_1 = arith.constant 0 : i32
    return %c0_i32, %c0_i32_0 : i32, i32
  }
  func.func @transform_3(%arg0: i32) -> (i32, i32) {
    %c0_i32 = arith.constant 0 : i32
    %c0_i32_0 = arith.constant 0 : i32
    %c0_i32_1 = arith.constant 0 : i32
    return %c0_i32, %c0_i32_0 : i32, i32
  }
  func.func @transform_4(%arg0: i32) -> (i32, i32) {
    %c0_i32 = arith.constant 0 : i32
    %c0_i32_0 = arith.constant 0 : i32
    %c0_i32_1 = arith.constant 0 : i32
    return %c0_i32, %c0_i32_0 : i32, i32
  }
  func.func @transform_5(%arg0: i32) -> (i32, i32) {
    %c0_i32 = arith.constant 0 : i32
    %c0_i32_0 = arith.constant 0 : i32
    %c0_i32_1 = arith.constant 0 : i32
    return %c0_i32, %c0_i32_0 : i32, i32
  }
  func.func @transform_6(%arg0: i32) -> (i32, i32) {
    %c0_i32 = arith.constant 0 : i32
    %c0_i32_0 = arith.constant 0 : i32
    %c0_i32_1 = arith.constant 0 : i32
    return %c0_i32, %c0_i32_0 : i32, i32
  }
}

module attributes {stable_mosaic.version = 11 : i64} {
  func.func @forward_kernel(%arg0: i32, %arg1: memref<8x45xf32, #tpu.memory_space<vmem>>, %arg2: memref<45x32xf32, #tpu.memory_space<vmem>>, %arg3: memref<1x32xf32, #tpu.memory_space<vmem>>, %arg4: memref<32x32xf32, #tpu.memory_space<vmem>>, %arg5: memref<1x32xf32, #tpu.memory_space<vmem>>, %arg6: memref<32x1xf32, #tpu.memory_space<vmem>>, %arg7: memref<1x1xf32, #tpu.memory_space<vmem>>, %arg8: memref<8x1xf32, #tpu.memory_space<vmem>>) attributes {dimension_semantics = [#tpu.dimension_semantics<parallel>], iteration_bounds = array<i64: 1>, scalar_prefetch = 0 : i64, scratch_operands = 0 : i64, tpu.core_type = #tpu.core_type<tc>, window_params = [{transform_indices = @transform_0, window_bounds = array<i64: 8, 45>}, {pipeline_mode = #tpu.pipeline_mode<synchronous>, transform_indices = @transform_1, window_bounds = array<i64: 45, 32>}, {pipeline_mode = #tpu.pipeline_mode<synchronous>, transform_indices = @transform_2, window_bounds = array<i64: 1, 32>}, {pipeline_mode = #tpu.pipeline_mode<synchronous>, transform_indices = @transform_3, window_bounds = array<i64: 32, 32>}, {pipeline_mode = #tpu.pipeline_mode<synchronous>, transform_indices = @transform_4, window_bounds = array<i64: 1, 32>}, {pipeline_mode = #tpu.pipeline_mode<synchronous>, transform_indices = @transform_5, window_bounds = array<i64: 32, 1>}, {pipeline_mode = #tpu.pipeline_mode<synchronous>, transform_indices = @transform_6, window_bounds = array<i64: 1, 1>}, {transform_indices = @transform_7, window_bounds = array<i64: 8, 1>}]} {
    %c0 = arith.constant 0 : index
    %c0_0 = arith.constant 0 : index
    %0 = vector.load %arg1[%c0, %c0_0] : memref<8x45xf32, #tpu.memory_space<vmem>>, vector<8x45xf32>
    %c0_1 = arith.constant 0 : index
    %c0_2 = arith.constant 0 : index
    %1 = vector.load %arg2[%c0_1, %c0_2] : memref<45x32xf32, #tpu.memory_space<vmem>>, vector<45x32xf32>
    %cst = arith.constant dense<0.000000e+00> : vector<8x32xf32>
    %2 = tpu.matmul %0, %1, %cst {dimension_numbers = #tpu.dot_dimension_numbers<[1], [0], [0], [1], [0, 0, 1, 1], [], []>} : vector<8x45xf32>, vector<45x32xf32>, vector<8x32xf32> -> vector<8x32xf32>
    %c0_3 = arith.constant 0 : index
    %c0_4 = arith.constant 0 : index
    %3 = vector.load %arg3[%c0_3, %c0_4] : memref<1x32xf32, #tpu.memory_space<vmem>>, vector<1x32xf32>
    %4 = vector.broadcast %3 : vector<1x32xf32> to vector<8x32xf32>
    %5 = arith.addf %2, %4 : vector<8x32xf32>
    %cst_5 = arith.constant 0.000000e+00 : f32
    %6 = vector.broadcast %cst_5 : f32 to vector<8x32xf32>
    %7 = arith.maximumf %5, %6 : vector<8x32xf32>
    %c0_6 = arith.constant 0 : index
    %c0_7 = arith.constant 0 : index
    %8 = vector.load %arg4[%c0_6, %c0_7] : memref<32x32xf32, #tpu.memory_space<vmem>>, vector<32x32xf32>
    %cst_8 = arith.constant dense<0.000000e+00> : vector<8x32xf32>
    %9 = tpu.matmul %7, %8, %cst_8 {dimension_numbers = #tpu.dot_dimension_numbers<[1], [0], [0], [1], [0, 0, 1, 1], [], []>} : vector<8x32xf32>, vector<32x32xf32>, vector<8x32xf32> -> vector<8x32xf32>
    %c0_9 = arith.constant 0 : index
    %c0_10 = arith.constant 0 : index
    %10 = vector.load %arg5[%c0_9, %c0_10] : memref<1x32xf32, #tpu.memory_space<vmem>>, vector<1x32xf32>
    %11 = vector.broadcast %10 : vector<1x32xf32> to vector<8x32xf32>
    %12 = arith.addf %9, %11 : vector<8x32xf32>
    %cst_11 = arith.constant 0.000000e+00 : f32
    %13 = vector.broadcast %cst_11 : f32 to vector<8x32xf32>
    %14 = arith.maximumf %12, %13 : vector<8x32xf32>
    %c0_12 = arith.constant 0 : index
    %c0_13 = arith.constant 0 : index
    %15 = vector.load %arg6[%c0_12, %c0_13] : memref<32x1xf32, #tpu.memory_space<vmem>>, vector<32x1xf32>
    %cst_14 = arith.constant dense<0.000000e+00> : vector<8x1xf32>
    %16 = tpu.matmul %14, %15, %cst_14 {dimension_numbers = #tpu.dot_dimension_numbers<[1], [0], [0], [1], [0, 0, 1, 1], [], []>} : vector<8x32xf32>, vector<32x1xf32>, vector<8x1xf32> -> vector<8x1xf32>
    %c0_15 = arith.constant 0 : index
    %c0_16 = arith.constant 0 : index
    %17 = vector.load %arg7[%c0_15, %c0_16] : memref<1x1xf32, #tpu.memory_space<vmem>>, vector<1x1xf32>
    %18 = vector.broadcast %17 : vector<1x1xf32> to vector<8x1xf32>
    %19 = arith.addf %16, %18 : vector<8x1xf32>
    %c0_17 = arith.constant 0 : index
    %c0_18 = arith.constant 0 : index
    %20 = vector.load %arg8[%c0_17, %c0_18] : memref<8x1xf32, #tpu.memory_space<vmem>>, vector<8x1xf32>
    tpu.vector_store %arg8[%c0_17, %c0_18], %19 {strides = array<i32>} : memref<8x1xf32, #tpu.memory_space<vmem>>, vector<8x1xf32>,
    return
  }
  func.func @transform_0(%arg0: i32) -> (i32, i32) {
    %c0_i32 = arith.constant 0 : i32
    %c0_i32_0 = arith.constant 0 : i32
    return %arg0, %c0_i32 : i32, i32
  }
  func.func @transform_1(%arg0: i32) -> (i32, i32) {
    %c0_i32 = arith.constant 0 : i32
    %c0_i32_0 = arith.constant 0 : i32
    %c0_i32_1 = arith.constant 0 : i32
    return %c0_i32, %c0_i32_0 : i32, i32
  }
  func.func @transform_2(%arg0: i32) -> (i32, i32) {
    %c0_i32 = arith.constant 0 : i32
    %c0_i32_0 = arith.constant 0 : i32
    %c0_i32_1 = arith.constant 0 : i32
    return %c0_i32, %c0_i32_0 : i32, i32
  }
  func.func @transform_3(%arg0: i32) -> (i32, i32) {
    %c0_i32 = arith.constant 0 : i32
    %c0_i32_0 = arith.constant 0 : i32
    %c0_i32_1 = arith.constant 0 : i32
    return %c0_i32, %c0_i32_0 : i32, i32
  }
  func.func @transform_4(%arg0: i32) -> (i32, i32) {
    %c0_i32 = arith.constant 0 : i32
    %c0_i32_0 = arith.constant 0 : i32
    %c0_i32_1 = arith.constant 0 : i32
    return %c0_i32, %c0_i32_0 : i32, i32
  }
  func.func @transform_5(%arg0: i32) -> (i32, i32) {
    %c0_i32 = arith.constant 0 : i32
    %c0_i32_0 = arith.constant 0 : i32
    %c0_i32_1 = arith.constant 0 : i32
    return %c0_i32, %c0_i32_0 : i32, i32
  }
  func.func @transform_6(%arg0: i32) -> (i32, i32) {
    %c0_i32 = arith.constant 0 : i32
    %c0_i32_0 = arith.constant 0 : i32
    %c0_i32_1 = arith.constant 0 : i32
    return %c0_i32, %c0_i32_0 : i32, i32
  }
  func.func @transform_7(%arg0: i32) -> (i32, i32) {
    %c0_i32 = arith.constant 0 : i32
    %c0_i32_0 = arith.constant 0 : i32
    return %arg0, %c0_i32 : i32, i32
  }
}

</mosaic_0001>

<bundles_post_ra>
// kernel: cvmlp_bn_forward.2
= control target key start
LH: loop header
LB: loop body
LE: loop exit
PB: predicated region body
PF: predicated region fallthrough
CT: control target
= control target key end

     0   :  { %vm47_vm0 = vcmask 1044480   ;;  %v283_v0 = vmov 0.0   ;;  %vm284_vm1 = vmmov 0   ;;  %vm43_vm2 = vcmask 367616   ;;  %s381_s1 = inlined_call_operand.vmem [shape: f32[45,32], index: 1, kind: input, shape index: {}]   ;;  %s382_s3 = inlined_call_operand.vmem [shape: f32[32,32], index: 3, kind: input, shape index: {}]   ;;  %s383_s0 = inlined_call_operand.vmem [shape: f32[8,45], index: 0, kind: input, shape index: {}]   ;;  %s384_s5 = inlined_call_operand.vmem [shape: f32[1,32], index: 5, kind: output, shape index: {0}]   ;;  %s385_s6 = inlined_call_operand.vmem [shape: f32[1,32], index: 6, kind: output, shape index: {1}]   ;;  %s386_s2 = inlined_call_operand.vmem [shape: f32[1,32], index: 2, kind: input, shape index: {}]   ;;  %s387_s4 = inlined_call_operand.vmem [shape: f32[1,32], index: 4, kind: input, shape index: {}]  }
   0x1   :  { %255 = vmatprep.subr.mxu0 %v283_v0  ;;  %v35_v1 = vld [vmem:[%s381_s1 + $0x28] sm:$0x1f]  ;;  %v34_v2 = vld [vmem:[%s381_s1 + $0x20] sm:$0xff]  ;;  %267 = vmatprep.mubr.msk.f32.mxu0 %vm284_vm1, %v283_v0  ;;  %v33_v3 = vld [vmem:[%s381_s1 + $0x18] sm:$0xff]  ;;  %vm26_vm3 = vcmask 253952   ;;  %vm133_vm4 = vcmask 261120  }
   0x2   :  { %256 = vmatpush3.msk.msra.mxu0 %vm47_vm0, %v35_v1  ;;  %270 = vmatprep.subr.mxu1 %v283_v0  ;;  %v125_v4 = vld [vmem:[%s382_s3 + $0x18] sm:$0xff]  ;;  %v32_v5 = vld [vmem:[%s381_s1 + $0x10] sm:$0xff]  ;;  %v31_v6 = vld [vmem:[%s381_s1 + $0x8] sm:$0xff]  ;;  %27 = vst.msk [vmem:[%s384_s5] sm:$0x1] %vm26_vm3, %v283_v0 }
   0x3   :  { %257 = vmatprep.subr.mxu0 %v283_v0  ;;  %278 = vmatprep.mubr.msk.f32.mxu1 %vm284_vm1, %v283_v0  ;;  %v30_v7 = vld [vmem:[%s381_s1] sm:$0xff]  ;;  %v124_v9 = vld [vmem:[%s382_s3 + $0x10] sm:$0xff]  ;;  %v123_v10 = vld [vmem:[%s382_s3 + $0x8] sm:$0xff]  ;;  %28 = vst.msk [vmem:[%s385_s6] sm:$0x1] %vm26_vm3, %v283_v0 }
   0x4   :  { %258 = vmatpush3.msra.mxu0 %v34_v2  ;;  %271 = vmatpush3.msra.mxu1 %v125_v4  ;;  %v29_v8 = vld [vmem:[%s383_s0] sm:$0xff] }
   0x5   :  { %259 = vmatprep.subr.mxu0 %v283_v0  ;;  %272 = vmatprep.subr.mxu1 %v283_v0  ;;  %v122_v11 = vld [vmem:[%s382_s3] sm:$0xff] }
   0x6   :  { %260 = vmatpush3.msra.mxu0 %v33_v3  ;;  %273 = vmatpush3.msra.mxu1 %v124_v9  ;;  %v238_v12 = vld [vmem:[%s386_s2] ss:$0 sm:$0xff] }
   0x7   :  { %261 = vmatprep.subr.mxu0 %v283_v0  ;;  %274 = vmatprep.subr.mxu1 %v283_v0  ;;  %v241_v17 = vld [vmem:[%s387_s4] ss:$0 sm:$0xff] }
   0x8   :  { %262 = vmatpush3.msra.mxu0 %v32_v5  ;;  %275 = vmatpush3.msra.mxu1 %v123_v10 }
   0x9   :  { %263 = vmatprep.subr.mxu0 %v283_v0  ;;  %276 = vmatprep.subr.mxu1 %v283_v0  ;;  %v208_v34 = vld [vmem:[%s384_s5] sm:$0x1] }
   0xa   :  { %264 = vmatpush3.msra.mxu0 %v31_v6  ;;  %277 = vmatpush3.msra.mxu1 %v122_v11  ;;  %v219_v37 = vld [vmem:[%s385_s6] sm:$0x1] }
   0xb   :  { %265 = vmatprep.subr.mxu0 %v283_v0 }
   0xc   :  { %266 = vmatpush3.msra.mxu0 %v30_v7 }
   0xd   :  { %268 = vmatmul.mubr.msk.f32.vlgmr.msra.gmra.mxu0 %vm43_vm2, %v29_v8 }
  0xcd   :  { %v117_v13 = vpop.f32.mrf.mxu0 }
  0xce   :  { %v118_v14 = vadd.f32 %v238_v12, %v117_v13 }
  0xcf   :  { %v269_v15 = vpop.f32.mrf.mxu0 }
  0xd0   :  { %v121_v16 = vmax.f32 %v118_v14, 0.0 }
  0xd2   :  { %279 = vmatmul.mubr.msk.f32.vlgmr.msra.gmra.mxu1 %vm133_vm4, %v121_v16 }
 0x192   :  { %v203_v18 = vpop.f32.mrf.mxu1 }
 0x193   :  { %v204_v19 = vadd.f32 %v241_v17, %v203_v18 }
 0x194   :  { %v280_v20 = vpop.f32.mrf.mxu1 }
 0x195   :  { %v207_v21 = vmax.f32 %v204_v19, 0.0 }
 0x197   :  { %v209_v22 = vsel %vm133_vm4, %v207_v21, 0.0  ;;  %v220_v23 = vmul.f32 %v207_v21, %v207_v21 }
 0x198   :  { %v210_v24 = vrot.slane %v209_v22, 4 }
 0x199   :  { %v221_v25 = vsel %vm133_vm4, %v220_v23, 0.0 }
 0x19a   :  { %v211_v26 = vadd.f32 %v210_v24, %v209_v22  ;;  %v222_v27 = vrot.slane %v221_v25, 4 }
 0x19c   :  { %v212_v28 = vrot.slane %v211_v26, 2  ;;  %v223_v29 = vadd.f32 %v222_v27, %v221_v25 }
 0x19e   :  { %v213_v30 = vadd.f32 %v212_v28, %v211_v26  ;;  %v224_v31 = vrot.slane %v223_v29, 2 }
 0x1a0   :  { %v214_v32 = vrot.slane %v213_v30, 1  ;;  %v225_v33 = vadd.f32 %v224_v31, %v223_v29 }
 0x1a2   :  { %v215_v35 = vadd.f32 %v214_v32, %v213_v30  ;;  %v226_v36 = vrot.slane %v225_v33, 1 }
 0x1a4   :  { %v216_v38 = vadd.f32 %v215_v35, %v208_v34  ;;  %v227_v39 = vadd.f32 %v226_v36, %v225_v33 }
 0x1a6   :  { %218 = vst.msk [vmem:[%s384_s5] sm:$0x1] %vm26_vm3, %v216_v38  ;;  %v228_v40 = vadd.f32 %v227_v39, %v219_v37 }
 0x1a8   :  { %229 = vst.msk [vmem:[%s385_s6] sm:$0x1] %vm26_vm3, %v228_v40 }

// kernel: cvmlp_bn_forward.3
= control target key start
LH: loop header
LB: loop body
LE: loop exit
PB: predicated region body
PF: predicated region fallthrough
CT: control target
= control target key end

     0   :  { %vm46_vm0 = vcmask 1044480   ;;  %v360_v0 = vmov 0.0   ;;  %vm361_vm1 = vmmov 0   ;;  %vm42_vm2 = vcmask 367616   ;;  %s464_s1 = inlined_call_operand.vmem [shape: f32[45,32], index: 1, kind: input, shape index: {}]   ;;  %s465_s3 = inlined_call_operand.vmem [shape: f32[32,32], index: 3, kind: input, shape index: {}]   ;;  %s466_s0 = inlined_call_operand.vmem [shape: f32[8,45], index: 0, kind: input, shape index: {}]   ;;  %s467_s2 = inlined_call_operand.vmem [shape: f32[1,32], index: 2, kind: input, shape index: {}]   ;;  %s468_s5 = inlined_call_operand.vmem [shape: f32[32,1], index: 5, kind: input, shape index: {}]   ;;  %s469_s6 = inlined_call_operand.<no memory space> [shape: f32[1,1], index: 6, kind: input, shape index: {}]   ;;  %s470_s4 = inlined_call_operand.vmem [shape: f32[1,32], index: 4, kind: input, shape index: {}]   ;;  %s471_s7 = inlined_call_operand.vmem [shape: f32[8,1], index: 7, kind: output, shape index: {}]  }
   0x1   :  { %321 = vmatprep.subr.mxu0 %v360_v0  ;;  %v34_v1 = vld [vmem:[%s464_s1 + $0x28] sm:$0x1f]  ;;  %v33_v2 = vld [vmem:[%s464_s1 + $0x20] sm:$0xff]  ;;  %333 = vmatprep.mubr.msk.f32.mxu0 %vm361_vm1, %v360_v0  ;;  %v32_v3 = vld [vmem:[%s464_s1 + $0x18] sm:$0xff]  ;;  %vm132_vm3 = vcmask 261120   ;;  %v12_v21 = vstv %s469_s6  ;;  %vm291_vm4 = vcmask 7168  }
   0x2   :  { %322 = vmatpush3.msk.msra.mxu0 %vm46_vm0, %v34_v1  ;;  %336 = vmatprep.subr.mxu1 %v360_v0  ;;  %v124_v4 = vld [vmem:[%s465_s3 + $0x18] sm:$0xff]  ;;  %v31_v5 = vld [vmem:[%s464_s1 + $0x10] sm:$0xff]  ;;  %v30_v6 = vld [vmem:[%s464_s1 + $0x8] sm:$0xff]  ;;  %13 = vst [vmem:[#allocation2] sm:$0x1] %v12_v21 }
   0x3   :  { %323 = vmatprep.subr.mxu0 %v360_v0  ;;  %344 = vmatprep.mubr.msk.f32.mxu1 %vm361_vm1, %v360_v0  ;;  %v29_v7 = vld [vmem:[%s464_s1] sm:$0xff]  ;;  %v123_v9 = vld [vmem:[%s465_s3 + $0x10] sm:$0xff]  ;;  %v122_v10 = vld [vmem:[%s465_s3 + $0x8] sm:$0xff] }
   0x4   :  { %324 = vmatpush3.msra.mxu0 %v33_v2  ;;  %337 = vmatpush3.msra.mxu1 %v124_v4  ;;  %v28_v8 = vld [vmem:[%s466_s0] sm:$0xff]  ;;  %v210_v17 = vld [vmem:[%s468_s5 + $0x18] sm:$0xff]  ;;  %v209_v18 = vld [vmem:[%s468_s5 + $0x10] sm:$0xff] }
   0x5   :  { %325 = vmatprep.subr.mxu0 %v360_v0  ;;  %338 = vmatprep.subr.mxu1 %v360_v0  ;;  %v121_v11 = vld [vmem:[%s465_s3] sm:$0xff]  ;;  %v208_v19 = vld [vmem:[%s468_s5 + $0x8] sm:$0xff] }
   0x6   :  { %326 = vmatpush3.msra.mxu0 %v32_v3  ;;  %339 = vmatpush3.msra.mxu1 %v123_v9  ;;  %v297_v12 = vld [vmem:[%s467_s2] ss:$0 sm:$0xff] }
   0x7   :  { %327 = vmatprep.subr.mxu0 %v360_v0  ;;  %340 = vmatprep.subr.mxu1 %v360_v0  ;;  %v207_v20 = vld [vmem:[%s468_s5] sm:$0xff] }
   0x8   :  { %328 = vmatpush3.msra.mxu0 %v31_v5  ;;  %341 = vmatpush3.msra.mxu1 %v122_v10  ;;  %v300_v22 = vld [vmem:[%s470_s4] ss:$0 sm:$0xff] }
   0x9   :  { %329 = vmatprep.subr.mxu0 %v360_v0  ;;  %342 = vmatprep.subr.mxu1 %v360_v0  ;;  %v302_v27 = vld [vmem:[#allocation2] ss:$0 sm:$0xff] }
   0xa   :  { %330 = vmatpush3.msra.mxu0 %v30_v6  ;;  %343 = vmatpush3.msra.mxu1 %v121_v11 }
   0xb   :  { %331 = vmatprep.subr.mxu0 %v360_v0  ;;  %347 = vmatprep.subr.mxu1 %v360_v0 }
   0xc   :  { %332 = vmatpush3.msra.mxu0 %v29_v7 }
   0xd   :  { %334 = vmatmul.mubr.msk.f32.vlgmr.msra.gmra.mxu0 %vm42_vm2, %v28_v8 }
  0xcd   :  { %v116_v13 = vpop.f32.mrf.mxu0 }
  0xce   :  { %v117_v14 = vadd.f32 %v297_v12, %v116_v13 }
  0xcf   :  { %v335_v15 = vpop.f32.mrf.mxu0 }
  0xd0   :  { %v120_v16 = vmax.f32 %v117_v14, 0.0 }
  0xd2   :  { %345 = vmatmul.mubr.msk.f32.vlgmr.msra.gmra.mxu1 %vm132_vm3, %v120_v16 }
  0xd3   :  { %348 = vmatpush3.msra.mxu1 %v210_v17  ;;  %355 = vmatprep.mubr.msk.f32.mxu1 %vm361_vm1, %v360_v0 }
  0xd4   :  { %349 = vmatprep.subr.mxu1 %v360_v0 }
  0xd5   :  { %350 = vmatpush3.msra.mxu1 %v209_v18 }
  0xd6   :  { %351 = vmatprep.subr.mxu1 %v360_v0 }
  0xd7   :  { %352 = vmatpush3.msra.mxu1 %v208_v19 }
  0xd8   :  { %353 = vmatprep.subr.mxu1 %v360_v0 }
  0xd9   :  { %354 = vmatpush3.msra.mxu1 %v207_v20 }
 0x192   :  { %v202_v23 = vpop.f32.mrf.mxu1 }
 0x193   :  { %v203_v24 = vadd.f32 %v300_v22, %v202_v23 }
 0x194   :  { %v346_v25 = vpop.f32.mrf.mxu1 }
 0x195   :  { %v206_v26 = vmax.f32 %v203_v24, 0.0 }
 0x197   :  { %356 = vmatmul.mubr.msk.f32.vlgmr.msra.gmra.mxu1 %vm132_vm3, %v206_v26 }
 0x257   :  { %v287_v28 = vpop.f32.mrf.mxu1 }
 0x258   :  { %v288_v29 = vadd.f32 %v302_v27, %v287_v28 }
 0x259   :  { %v357_v30 = vpop.f32.mrf.mxu1 }
 0x25a   :  { %292 = vst.msk [vmem:[%s471_s7] sm:$0xff] %vm291_vm4, %v288_v29 }

</bundles_post_ra>
